<compile_context>
chip_gen: v6e
topology: v6e:2x2x1
jax: 0.10.0
libtpu: 0.0.40
codegen_flags: <defaults>
</compile_context>

<pallas_src>
import functools

import jax
import jax.numpy as jnp
from jax.experimental import pallas as pl
from jax.experimental.pallas import tpu as pltpu

_LANE = 128
_VMEM_LIMIT_BYTES = 48 * 1024 * 1024     # explicit scoped-VMEM limit (< v7x 64MiB)
_FUSE_VMEM_BUDGET = 16 * 1024 * 1024     # use the fused kernel when resident data fits
_COMPUTE_DTYPE = jnp.bfloat16            # MXU input dtype; accum/epilogue stay f32


def _round_up(x, m):
    return ((x + m - 1) // m) * m


# --------------------------------------------------------------------------- #
# In-kernel subblock math: conv1d (im2col + single matmul) + folded BN
# (+ residual on the last subblock) + ReLU.
# --------------------------------------------------------------------------- #
def _conv_bn_relu(x2d, w_ref, scale_ref, bias_ref, K, pad, res2d=None):
    """x2d: (L, Cin) compute-dtype; w_ref: (K*Cin, Ct); scale/bias: (1, Ct) f32."""
    L, cin = x2d.shape
    cols = []
    for k in range(K):                       # K is small & static -> unrolled
        d = k - pad                          # tap offset; want col[l] = x[l + d]
        if d == 0:
            col = x2d
        elif d > 0:
            col = jnp.concatenate(
                [x2d[d:, :], jnp.zeros((d, cin), x2d.dtype)], axis=0)
        else:
            col = jnp.concatenate(
                [jnp.zeros((-d, cin), x2d.dtype), x2d[:L + d, :]], axis=0)
        cols.append(col)
    # (L, K*Cin) im2col slab -> one deep-contraction MXU matmul.
    patches = cols[0] if K == 1 else jnp.concatenate(cols, axis=1)
    acc = jnp.dot(patches, w_ref[...], preferred_element_type=jnp.float32)
    y = acc * scale_ref[0] + bias_ref[0]     # folded eval-mode BatchNorm (f32)
    if res2d is not None:                    # residual add BEFORE ReLU (last subblock)
        y = y + res2d
    return jnp.maximum(y, 0.0)


# --------------------------------------------------------------------------- #
# Tiled (per-subblock) path: grid = (Cout tiles, batch); weight tile resident.
# --------------------------------------------------------------------------- #
def _make_subblock_kernel(K, pad, with_res):
    if with_res:
        def kernel(x_ref, w_ref, sc_ref, b_ref, res_ref, o_ref):
            y = _conv_bn_relu(x_ref[0], w_ref, sc_ref, b_ref, K, pad,
                              res2d=res_ref[0])
            o_ref[0] = y.astype(o_ref.dtype)
    else:
        def kernel(x_ref, w_ref, sc_ref, b_ref, o_ref):
            y = _conv_bn_relu(x_ref[0], w_ref, sc_ref, b_ref, K, pad)
            o_ref[0] = y.astype(o_ref.dtype)
    return kernel


def _subblock_call(x, w2, scale, bias, res, K, out_dtype):
    """x: (N, L, Cin); w2: (K*Cin, Cp); scale/bias: (1, Cp); res: (N, L, Cp)|None."""
    N, L, cin = x.shape
    kcin, cp = w2.shape
    pad = K // 2
    tcout = 256 if cp % 256 == 0 else _LANE          # lane-dense output tiles
    n_j = cp // tcout

    in_specs = [
        pl.BlockSpec((1, L, cin), lambda j, b: (b, 0, 0)),
        pl.BlockSpec((kcin, tcout), lambda j, b: (0, j)),   # resident along batch
        pl.BlockSpec((1, tcout), lambda j, b: (0, j)),
        pl.BlockSpec((1, tcout), lambda j, b: (0, j)),
    ]
    args = [x, w2, scale, bias]
    if res is not None:
        in_specs.append(pl.BlockSpec((1, L, tcout), lambda j, b: (b, 0, j)))
        args.append(res)

    return pl.pallas_call(
        _make_subblock_kernel(K, pad, res is not None),
        out_shape=jax.ShapeDtypeStruct((N, L, cp), out_dtype),
        grid_spec=pltpu.PrefetchScalarGridSpec(
            num_scalar_prefetch=0,
            grid=(n_j, N),                    # Cout-tile outer, batch inner
            in_specs=in_specs,
            out_specs=pl.BlockSpec((1, L, tcout), lambda j, b: (b, 0, j)),
        ),
        compiler_params=pltpu.CompilerParams(
            dimension_semantics=("parallel", "parallel"),
            vmem_limit_bytes=_VMEM_LIMIT_BYTES,
        ),
    )(*args)


# --------------------------------------------------------------------------- #
# Fused path: whole subblock chain in one pallas_call; activations never leave
# VMEM between subblocks; only the final output is written to HBM.
# --------------------------------------------------------------------------- #
def _fused_block_call(x, prep, res_sum, K, out_dtype):
    N, L, cin0 = x.shape
    S = len(prep)
    cp = prep[0][0].shape[1]
    pad = K // 2

    def kernel(*refs):
        x_ref = refs[0]
        w_refs = refs[1:1 + S]
        sc_refs = refs[1 + S:1 + 2 * S]
        b_refs = refs[1 + 2 * S:1 + 3 * S]
        res_ref = refs[1 + 3 * S]
        o_ref = refs[2 + 3 * S]

        a = x_ref[0]                                     # (L, Cin0) bf16
        for s in range(S):                               # static unroll over subblocks
            res2d = res_ref[0] if s == S - 1 else None
            y = _conv_bn_relu(a, w_refs[s], sc_refs[s], b_refs[s], K, pad, res2d)
            if s < S - 1:
                a = y.astype(_COMPUTE_DTYPE)             # stays in VMEM/vregs
            else:
                o_ref[0] = y.astype(o_ref.dtype)

    in_specs = [pl.BlockSpec((1, L, cin0), lambda b: (b, 0, 0))]
    args = [x]
    for (w2, _, _) in prep:
        in_specs.append(pl.BlockSpec(w2.shape, lambda b: (0, 0)))
        args.append(w2)
    for (_, sc, _) in prep:
        in_specs.append(pl.BlockSpec(sc.shape, lambda b: (0, 0)))
        args.append(sc)
    for (_, _, bb) in prep:
        in_specs.append(pl.BlockSpec(bb.shape, lambda b: (0, 0)))
        args.append(bb)
    in_specs.append(pl.BlockSpec((1, L, cp), lambda b: (b, 0, 0)))
    args.append(res_sum)

    return pl.pallas_call(
        kernel,
        out_shape=jax.ShapeDtypeStruct((N, L, cp), out_dtype),
        grid_spec=pltpu.PrefetchScalarGridSpec(
            num_scalar_prefetch=0,
            grid=(N,),
            in_specs=in_specs,
            out_specs=pl.BlockSpec((1, L, cp), lambda b: (b, 0, 0)),
        ),
        compiler_params=pltpu.CompilerParams(
            dimension_semantics=("parallel",),
            vmem_limit_bytes=_VMEM_LIMIT_BYTES,
        ),
    )(*args)


# --------------------------------------------------------------------------- #
# Parameter packing / synthetic init / forward
# --------------------------------------------------------------------------- #
def _pack_subblock_params(p, cin_padded, cp, cout):
    """Torch-layout (Cout, Cin, K) conv weight -> (K*Cin_p, Cp) bf16, padded."""
    w = p["w"]
    cout_raw, cin_raw, K = w.shape
    w_kio = jnp.transpose(w, (2, 1, 0))                        # (K, Cin, Cout)
    w_kio = jnp.pad(w_kio, ((0, 0), (0, cin_padded - cin_raw), (0, cp - cout_raw)))
    w2 = w_kio.reshape(K * cin_padded, cp).astype(_COMPUTE_DTYPE)
    scale = jnp.pad(p["scale"], (0, cp - cout)).reshape(1, cp).astype(jnp.float32)
    bias = jnp.pad(p["bias"], (0, cp - cout)).reshape(1, cp).astype(jnp.float32)
    return w2, scale, bias


def init_jasper_params(key, n_subblocks, in_channels, out_channels, kernel_size):
    """Synthetic params; shapes match nn.Conv1d (Cout,Cin,K) / nn.BatchNorm1d."""
    params = []
    eps = 1e-5
    for i in range(n_subblocks):
        cin = in_channels if i == 0 else out_channels
        key, k1, k2, k3, k4 = jax.random.split(key, 5)
        w = 0.1 * jax.random.normal(k1, (out_channels, cin, kernel_size), jnp.float32)
        conv_b = 0.1 * jax.random.normal(k2, (out_channels,), jnp.float32)
        gamma = 1.0 + 0.1 * jax.random.normal(k3, (out_channels,), jnp.float32)
        beta = 0.1 * jax.random.normal(k4, (out_channels,), jnp.float32)
        running_mean = jnp.zeros((out_channels,), jnp.float32)
        running_var = jnp.ones((out_channels,), jnp.float32)
        # Fold conv bias + eval-mode BN into per-channel scale/bias.
        scale = gamma / jnp.sqrt(running_var + eps)
        bias = scale * (conv_b - running_mean) + beta
        params.append({"w": w, "scale": scale, "bias": bias})
    return params


@functools.partial(jax.jit, static_argnames=("force_unfused",))
def jasper_block_forward(x_nlc, residuals_nlc, params, force_unfused=False):
    """x_nlc: (N, L, Cin); residuals_nlc: (R, N, L, Cout) stacked residuals."""
    N, L, cin0 = x_nlc.shape
    S = len(params)
    cout, _, K = params[0]["w"].shape
    # TODO(synk): even kernel_size changes the PyTorch Conv1d output length
    #             (padding=K//2 is not 'same'); only odd K is supported here.
    assert K % 2 == 1, "only odd kernel_size gives same-length Conv1d output"
    cp = _round_up(cout, _LANE)            # lane-dense channel padding (zeros)
    out_dtype = x_nlc.dtype

    prep = []
    for i, p in enumerate(params):
        cin_padded = cin0 if i == 0 else cp
        prep.append(_pack_subblock_params(p, cin_padded, cp, cout))

    # residuals are summed once (PyTorch: `x += res` for each res, before ReLU
    # of the last subblock) and zero-padded along channels.
    res_sum = jnp.sum(residuals_nlc.astype(jnp.float32), axis=0)
    res_sum = jnp.pad(res_sum, ((0, 0), (0, 0), (0, cp - cout)))

    x = x_nlc.astype(_COMPUTE_DTYPE)

    # Fuse the whole chain when resident weights + activation/im2col slabs fit.
    w_bytes = sum(w.size * w.dtype.itemsize for (w, _, _) in prep)
    slab_bytes = L * K * cp * 2 + 3 * L * cp * 4
    fuse = (not force_unfused) and (w_bytes + slab_bytes < _FUSE_VMEM_BUDGET)

    if fuse:
        out = _fused_block_call(x, prep, res_sum, K, out_dtype)
    else:
        for i, (w2, sc, b) in enumerate(prep):
            is_last = i == S - 1
            x = _subblock_call(
                x, w2, sc, b,
                res_sum if is_last else None,          # no zero-residual DMA
                K,
                out_dtype if is_last else _COMPUTE_DTYPE,
            )
        out = x
    return out[:, :, :cout]


def jasper_block_reference(x_nlc, residuals_nlc, params):
    """Pure-JAX reference mirroring the kernel's dtype flow (bf16 conv operands,
    f32 accumulation/epilogue, bf16 inter-subblock activations)."""
    S = len(params)
    res_sum = jnp.sum(residuals_nlc.astype(jnp.float32), axis=0)
    x = x_nlc.astype(_COMPUTE_DTYPE).astype(jnp.float32)
    for i, p in enumerate(params):
        w = p["w"]                                     # (Cout, Cin, K)
        cout, _, K = w.shape
        pad = K // 2
        w_kio = jnp.transpose(w, (2, 1, 0)).astype(_COMPUTE_DTYPE).astype(jnp.float32)
        N, L, _ = x.shape
        xp = jnp.pad(x, ((0, 0), (pad, pad), (0, 0)))
        y = jnp.zeros((N, L, cout), jnp.float32)
        for k in range(K):
            y = y + jnp.einsum("nlc,co->nlo", xp[:, k:k + L, :], w_kio[k])
        y = y * p["scale"] + p["bias"]
        if i == S - 1:
            y = y + res_sum
        y = jnp.maximum(y, 0.0)
        x = y.astype(_COMPUTE_DTYPE).astype(jnp.float32) if i < S - 1 else y
    return x.astype(x_nlc.dtype)


if __name__ == "__main__":
    N = 2            # batch
    Cin = 4          # in_channels
    Cout = 8         # out_channels
    L = 16           # sequence length
    K = 3            # kernel_size (odd)
    n_subblocks = 2
    dropout = 0.1    # Dropout is identity at inference.

    key = jax.random.PRNGKey(0)
    key, kx, kr1, kr2 = jax.random.split(key, 4)
    x = jax.random.normal(kx, (N, L, Cin), jnp.float32)          # NLC layout
    residuals = jnp.stack([
        jax.random.normal(kr1, (N, L, Cout), jnp.float32),
        jax.random.normal(kr2, (N, L, Cout), jnp.float32),
    ])
    params = init_jasper_params(key, n_subblocks, Cin, Cout, K)

    out_fused = jasper_block_forward(x, residuals, params)
    out_tiled = jasper_block_forward(x, residuals, params, force_unfused=True)
    jax.block_until_ready((out_fused, out_tiled))

    assert out_fused.shape == (N, L, Cout)
    assert out_tiled.shape == (N, L, Cout)

    ref = jasper_block_reference(x, residuals, params)
    assert jnp.allclose(out_fused, ref, atol=2e-2, rtol=2e-2), (
        "fused mismatch, max abs err = %f" % float(jnp.max(jnp.abs(out_fused - ref))))
    assert jnp.allclose(out_tiled, ref, atol=2e-2, rtol=2e-2), (
        "tiled mismatch, max abs err = %f" % float(jnp.max(jnp.abs(out_tiled - ref))))
    print("KERNEL_OK")
</pallas_src>

<mosaic_0001>
module attributes {stable_mosaic.version = 11 : i64} {
  func.func @kernel(%arg0: i32, %arg1: memref<1x16x4xbf16, #tpu.memory_space<vmem>>, %arg2: memref<12x128xbf16, #tpu.memory_space<vmem>>, %arg3: memref<384x128xbf16, #tpu.memory_space<vmem>>, %arg4: memref<1x128xf32, #tpu.memory_space<vmem>>, %arg5: memref<1x128xf32, #tpu.memory_space<vmem>>, %arg6: memref<1x128xf32, #tpu.memory_space<vmem>>, %arg7: memref<1x128xf32, #tpu.memory_space<vmem>>, %arg8: memref<1x16x128xf32, #tpu.memory_space<vmem>>, %arg9: memref<1x16x128xf32, #tpu.memory_space<vmem>>) attributes {dimension_semantics = [#tpu.dimension_semantics<parallel>], iteration_bounds = array<i64: 2>, scalar_prefetch = 0 : i64, scratch_operands = 0 : i64, tpu.core_type = #tpu.core_type<tc>, window_params = [{transform_indices = @transform_0, window_bounds = array<i64: 1, 16, 4>}, {pipeline_mode = #tpu.pipeline_mode<synchronous>, transform_indices = @transform_1, window_bounds = array<i64: 12, 128>}, {pipeline_mode = #tpu.pipeline_mode<synchronous>, transform_indices = @transform_2, window_bounds = array<i64: 384, 128>}, {pipeline_mode = #tpu.pipeline_mode<synchronous>, transform_indices = @transform_3, window_bounds = array<i64: 1, 128>}, {pipeline_mode = #tpu.pipeline_mode<synchronous>, transform_indices = @transform_4, window_bounds = array<i64: 1, 128>}, {pipeline_mode = #tpu.pipeline_mode<synchronous>, transform_indices = @transform_5, window_bounds = array<i64: 1, 128>}, {pipeline_mode = #tpu.pipeline_mode<synchronous>, transform_indices = @transform_6, window_bounds = array<i64: 1, 128>}, {transform_indices = @transform_7, window_bounds = array<i64: 1, 16, 128>}, {transform_indices = @transform_8, window_bounds = array<i64: 1, 16, 128>}]} {
    %c0 = arith.constant 0 : index
    %c0_0 = arith.constant 0 : index
    %c0_1 = arith.constant 0 : index
    %0 = vector.load %arg1[%c0, %c0_0, %c0_1] : memref<1x16x4xbf16, #tpu.memory_space<vmem>>, vector<1x16x4xbf16>
    %1 = vector.shape_cast %0 : vector<1x16x4xbf16> to vector<16x4xbf16>
    %cst = arith.constant 0.000000e+00 : bf16
    %2 = vector.broadcast %cst : bf16 to vector<1x4xbf16>
    %3 = vector.extract_strided_slice %1 {offsets = [0, 0], sizes = [15, 4], strides = [1, 1]} : vector<16x4xbf16> to vector<15x4xbf16>
    %4 = tpu.concatenate %2, %3 in 0 : vector<1x4xbf16>, vector<15x4xbf16> -> vector<16x4xbf16>
    %5 = vector.extract_strided_slice %1 {offsets = [1, 0], sizes = [15, 4], strides = [1, 1]} : vector<16x4xbf16> to vector<15x4xbf16>
    %cst_2 = arith.constant 0.000000e+00 : bf16
    %6 = vector.broadcast %cst_2 : bf16 to vector<1x4xbf16>
    %7 = tpu.concatenate %5, %6 in 0 : vector<15x4xbf16>, vector<1x4xbf16> -> vector<16x4xbf16>
    %8 = tpu.concatenate %4, %1, %7 in 1 : vector<16x4xbf16>, vector<16x4xbf16>, vector<16x4xbf16> -> vector<16x12xbf16>
    %c0_3 = arith.constant 0 : index
    %c0_4 = arith.constant 0 : index
    %9 = vector.load %arg2[%c0_3, %c0_4] : memref<12x128xbf16, #tpu.memory_space<vmem>>, vector<12x128xbf16>
    %cst_5 = arith.constant dense<0.000000e+00> : vector<16x128xf32>
    %10 = tpu.matmul %8, %9, %cst_5 {dimension_numbers = #tpu.dot_dimension_numbers<[1], [0], [0], [1], [0, 0, 1, 1], [], []>} : vector<16x12xbf16>, vector<12x128xbf16>, vector<16x128xf32> -> vector<16x128xf32>
    %c0_6 = arith.constant 0 : index
    %c0_7 = arith.constant 0 : index
    %11 = vector.load %arg4[%c0_6, %c0_7] : memref<1x128xf32, #tpu.memory_space<vmem>>, vector<1x128xf32>
    %12 = vector.shape_cast %11 : vector<1x128xf32> to vector<128xf32>
    %13 = vector.shape_cast %12 : vector<128xf32> to vector<1x128xf32>
    %14 = vector.broadcast %13 : vector<1x128xf32> to vector<16x128xf32>
    %15 = arith.mulf %10, %14 : vector<16x128xf32>
    %c0_8 = arith.constant 0 : index
    %c0_9 = arith.constant 0 : index
    %16 = vector.load %arg6[%c0_8, %c0_9] : memref<1x128xf32, #tpu.memory_space<vmem>>, vector<1x128xf32>
    %17 = vector.shape_cast %16 : vector<1x128xf32> to vector<128xf32>
    %18 = vector.shape_cast %17 : vector<128xf32> to vector<1x128xf32>
    %19 = vector.broadcast %18 : vector<1x128xf32> to vector<16x128xf32>
    %20 = arith.addf %15, %19 : vector<16x128xf32>
    %cst_10 = arith.constant 0.000000e+00 : f32
    %21 = vector.broadcast %cst_10 : f32 to vector<16x128xf32>
    %22 = arith.maximumf %20, %21 : vector<16x128xf32>
    %23 = arith.truncf %22 : vector<16x128xf32> to vector<16x128xbf16>
    %c0_11 = arith.constant 0 : index
    %c0_12 = arith.constant 0 : index
    %c0_13 = arith.constant 0 : index
    %24 = vector.load %arg8[%c0_11, %c0_12, %c0_13] : memref<1x16x128xf32, #tpu.memory_space<vmem>>, vector<1x16x128xf32>
    %25 = vector.shape_cast %24 : vector<1x16x128xf32> to vector<16x128xf32>
    %cst_14 = arith.constant 0.000000e+00 : bf16
    %26 = vector.broadcast %cst_14 : bf16 to vector<1x128xbf16>
    %27 = vector.extract_strided_slice %23 {offsets = [0, 0], sizes = [15, 128], strides = [1, 1]} : vector<16x128xbf16> to vector<15x128xbf16>
    %28 = tpu.concatenate %26, %27 in 0 : vector<1x128xbf16>, vector<15x128xbf16> -> vector<16x128xbf16>
    %29 = vector.extract_strided_slice %23 {offsets = [1, 0], sizes = [15, 128], strides = [1, 1]} : vector<16x128xbf16> to vector<15x128xbf16>
    %cst_15 = arith.constant 0.000000e+00 : bf16
    %30 = vector.broadcast %cst_15 : bf16 to vector<1x128xbf16>
    %31 = tpu.concatenate %29, %30 in 0 : vector<15x128xbf16>, vector<1x128xbf16> -> vector<16x128xbf16>
    %32 = tpu.concatenate %28, %23, %31 in 1 : vector<16x128xbf16>, vector<16x128xbf16>, vector<16x128xbf16> -> vector<16x384xbf16>
    %c0_16 = arith.constant 0 : index
    %c0_17 = arith.constant 0 : index
    %33 = vector.load %arg3[%c0_16, %c0_17] : memref<384x128xbf16, #tpu.memory_space<vmem>>, vector<384x128xbf16>
    %cst_18 = arith.constant dense<0.000000e+00> : vector<16x128xf32>
    %34 = tpu.matmul %32, %33, %cst_18 {dimension_numbers = #tpu.dot_dimension_numbers<[1], [0], [0], [1], [0, 0, 1, 1], [], []>} : vector<16x384xbf16>, vector<384x128xbf16>, vector<16x128xf32> -> vector<16x128xf32>
    %c0_19 = arith.constant 0 : index
    %c0_20 = arith.constant 0 : index
    %35 = vector.load %arg5[%c0_19, %c0_20] : memref<1x128xf32, #tpu.memory_space<vmem>>, vector<1x128xf32>
    %36 = vector.shape_cast %35 : vector<1x128xf32> to vector<128xf32>
    %37 = vector.shape_cast %36 : vector<128xf32> to vector<1x128xf32>
    %38 = vector.broadcast %37 : vector<1x128xf32> to vector<16x128xf32>
    %39 = arith.mulf %34, %38 : vector<16x128xf32>
    %c0_21 = arith.constant 0 : index
    %c0_22 = arith.constant 0 : index
    %40 = vector.load %arg7[%c0_21, %c0_22] : memref<1x128xf32, #tpu.memory_space<vmem>>, vector<1x128xf32>
    %41 = vector.shape_cast %40 : vector<1x128xf32> to vector<128xf32>
    %42 = vector.shape_cast %41 : vector<128xf32> to vector<1x128xf32>
    %43 = vector.broadcast %42 : vector<1x128xf32> to vector<16x128xf32>
    %44 = arith.addf %39, %43 : vector<16x128xf32>
    %45 = arith.addf %44, %25 : vector<16x128xf32>
    %cst_23 = arith.constant 0.000000e+00 : f32
    %46 = vector.broadcast %cst_23 : f32 to vector<16x128xf32>
    %47 = arith.maximumf %45, %46 : vector<16x128xf32>
    %c0_24 = arith.constant 0 : index
    %c0_25 = arith.constant 0 : index
    %c0_26 = arith.constant 0 : index
    %48 = vector.load %arg9[%c0_24, %c0_25, %c0_26] : memref<1x16x128xf32, #tpu.memory_space<vmem>>, vector<1x16x128xf32>
    %49 = vector.shape_cast %48 : vector<1x16x128xf32> to vector<16x128xf32>
    %50 = vector.shape_cast %47 : vector<16x128xf32> to vector<1x16x128xf32>
    tpu.vector_store %arg9[%c0_24, %c0_25, %c0_26], %50 {strides = array<i32>} : memref<1x16x128xf32, #tpu.memory_space<vmem>>, vector<1x16x128xf32>,
    return
  }
  func.func @transform_0(%arg0: i32) -> (i32, i32, i32) {
    %c0_i32 = arith.constant 0 : i32
    %c0_i32_0 = arith.constant 0 : i32
    %c0_i32_1 = arith.constant 0 : i32
    return %arg0, %c0_i32, %c0_i32_0 : i32, i32, i32
  }
  func.func @transform_1(%arg0: i32) -> (i32, i32) {
    %c0_i32 = arith.constant 0 : i32
    %c0_i32_0 = arith.constant 0 : i32
    %c0_i32_1 = arith.constant 0 : i32
    return %c0_i32, %c0_i32_0 : i32, i32
  }
  func.func @transform_2(%arg0: i32) -> (i32, i32) {
    %c0_i32 = arith.constant 0 : i32
    %c0_i32_0 = arith.constant 0 : i32
    %c0_i32_1 = arith.constant 0 : i32
    return %c0_i32, %c0_i32_0 : i32, i32
  }
  func.func @transform_3(%arg0: i32) -> (i32, i32) {
    %c0_i32 = arith.constant 0 : i32
    %c0_i32_0 = arith.constant 0 : i32
    %c0_i32_1 = arith.constant 0 : i32
    return %c0_i32, %c0_i32_0 : i32, i32
  }
  func.func @transform_4(%arg0: i32) -> (i32, i32) {
    %c0_i32 = arith.constant 0 : i32
    %c0_i32_0 = arith.constant 0 : i32
    %c0_i32_1 = arith.constant 0 : i32
    return %c0_i32, %c0_i32_0 : i32, i32
  }
  func.func @transform_5(%arg0: i32) -> (i32, i32) {
    %c0_i32 = arith.constant 0 : i32
    %c0_i32_0 = arith.constant 0 : i32
    %c0_i32_1 = arith.constant 0 : i32
    return %c0_i32, %c0_i32_0 : i32, i32
  }
  func.func @transform_6(%arg0: i32) -> (i32, i32) {
    %c0_i32 = arith.constant 0 : i32
    %c0_i32_0 = arith.constant 0 : i32
    %c0_i32_1 = arith.constant 0 : i32
    return %c0_i32, %c0_i32_0 : i32, i32
  }
  func.func @transform_7(%arg0: i32) -> (i32, i32, i32) {
    %c0_i32 = arith.constant 0 : i32
    %c0_i32_0 = arith.constant 0 : i32
    %c0_i32_1 = arith.constant 0 : i32
    return %arg0, %c0_i32, %c0_i32_0 : i32, i32, i32
  }
  func.func @transform_8(%arg0: i32) -> (i32, i32, i32) {
    %c0_i32 = arith.constant 0 : i32
    %c0_i32_0 = arith.constant 0 : i32
    %c0_i32_1 = arith.constant 0 : i32
    return %arg0, %c0_i32, %c0_i32_0 : i32, i32, i32
  }
}

</mosaic_0001>

<bundles_post_ra>
// kernel: jasper_block_forward.1
= control target key start
LH: loop header
LB: loop body
LE: loop exit
PB: predicated region body
PF: predicated region fallthrough
CT: control target
= control target key end

     0   :  { %s1022_s27 = smov 0   ;;  %s1163_s0 = inlined_call_operand.vmem [shape: bf16[2,16,4], index: 0, kind: input, shape index: {}]   ;;  %s1164_s1 = inlined_call_operand.vmem [shape: bf16[12,128], index: 1, kind: input, shape index: {}]   ;;  %s1165_s2 = inlined_call_operand.vmem [shape: bf16[384,128], index: 2, kind: input, shape index: {}]   ;;  %s1166_s3 = inlined_call_operand.vmem [shape: f32[1,128], index: 3, kind: input, shape index: {}]   ;;  %s1167_s4 = inlined_call_operand.vmem [shape: f32[1,128], index: 4, kind: input, shape index: {}]   ;;  %s1168_s5 = inlined_call_operand.vmem [shape: f32[1,128], index: 5, kind: input, shape index: {}]   ;;  %s1169_s6 = inlined_call_operand.vmem [shape: f32[1,128], index: 6, kind: input, shape index: {}]   ;;  %s1170_s7 = inlined_call_operand.vmem [shape: f32[2,16,128], index: 7, kind: input, shape index: {}]   ;;  %s1171_s8 = inlined_call_operand.vmem [shape: f32[2,16,128], index: 8, kind: output, shape index: {}]  }
   0x1 LB: > { %s821_s28 = sadd.s32 4294967295, %s971_s27   ;;  %p825_p0 = scmp.ge.s32.totalorder %s971_s27, 1  ;;  %s971_s27 = sphi %s1022_s27, %s18_s27  }
   0x2   : > { %p272_p1 = scmp.lt.s32.totalorder %s971_s27, 3 }
   0x4   : > { %p273_p2 = pnand %p825_p0, %p272_p1 }
   0x5   : > { %p311_p3 = scmp.lt.s32.totalorder (!%p273_p2), %s821_s28, 1  ;;  %s975_s17 = smov (!%p273_p2), 4  }
   0x6   : > { %276 = sbr.rel (%p273_p2) target bundleno = 562 (0x232), region = 52  ;;  %s976_s26 = smov (!%p273_p2), 8  }
   0xb   : > { %vm350_vm0 = vsmask.f32 7424  ;;  %s1177_s28 = smov (!%p311_p3, %s821_s28), 1  ;;  %v973_v0 = vmov 0.0   ;;  %vm375_vm1 = vcmask 1045504   ;;  %vm974_vm2 = vmmov 0  }
   0xc   : > { %901 = vmatprep.subr.bf16.mxu0 %v973_v0  ;;  %v940_v1 = vld [vmem:[%s1164_s1] sm:$0x3f]   ;;  %s865_s9 = sshll.u32 %s1177_s28, 3  ;;  %903 = vmatprep.mubr.msk.bf16.mxu0 %vm974_vm2, %v973_v0  ;;  %v941_v2 = vld [vmem:[%s1165_s2 + $0x78] sm:$0xff]   ;;  %vm349_vm3 = vcmask 1047552   ;;  %v944_v8 = vld [vmem:[%s1165_s2 + $0x70] sm:$0xff]  }
   0xd   : > { %v942_v3 = vld [vmem:[%s1165_s2 + $0x38] sm:$0xff]   ;;  %s315_s16 = scalar_lea.vmem %s1163_s0, %s865_s9  ;;  %v377_v4 = vsel %vm375_vm1, %v940_v1, 0  ;;  %870 = vmatprep.subr.bf16.mxu1 %v941_v2  ;;  %v945_v9 = vld [vmem:[%s1165_s2 + $0x30] sm:$0xff]   ;;  %vm1056_vm4 = vmand %vm349_vm3, %vm350_vm0  ;;  %vm342_vm5 = vcmask 1040384   ;;  %vm343_vm6 = vsmask.f32 256 }
   0xe   : > { %v939_v5 = vld [vmem:[%s315_s16] sm:$0xff]   ;;  %902 = vmatpush3.bf16.msra.mxu0 %v377_v4  ;;  %871 = vmatpush3.bf16.msra.mxu1 %v942_v3  ;;  %v947_v13 = vld [vmem:[%s1165_s2 + $0x68] sm:$0xff]   ;;  %vm1068_vm7 = vmand %vm342_vm5, %vm343_vm6  ;;  %vm358_vm8 = vcmask 31744   ;;  %vm362_vm9 = vcmask 64512   ;;  %vm372_vm10 = vcmask 97280   ;;  %s866_s29 = sshll.u32 %s1177_s28, 4 }
   0xf   : > { %907 = vmatprep.subr.bf16.mxu0 %v973_v0  ;;  %353 = vrot.lane.b32.xlu0 %v939_v5, %s975_s17  ;;  %v335_v6 = vshrl.u32 %v939_v5, 16  ;;  %v338_v7 = vshll.u32 %v939_v5, 16  ;;  %v948_v16 = vld [vmem:[%s1165_s2 + $0x28] sm:$0xff]   ;;  %v943_v21 = vld [vmem:[%s1165_s2 + $0xb8] sm:$0xff]   ;;  %v946_v25 = vld [vmem:[%s1165_s2 + $0xb0] sm:$0xff]   ;;  %s320_s12 = scalar_lea.vmem %s1170_s7, %s866_s29  ;;  %s325_s16 = scalar_lea.vmem %s1171_s8, %s866_s29 }
  0x10   : > { %872 = vmatprep.subr.bf16.mxu1 %v944_v8  ;;  %v949_v26 = vld [vmem:[%s1165_s2 + $0xa8] sm:$0xff]   ;;  %v950_v27 = vld [vmem:[%s1165_s2 + $0x60] sm:$0xff]   ;;  %v953_v30 = vld [vmem:[%s1165_s2 + $0x58] sm:$0xff]  }
  0x11   : > { %v346_v10 = vrot.slane %v338_v7, 1  ;;  %v337_v12 = vrot.slane %v335_v6, 7  ;;  %v951_v28 = vld [vmem:[%s1165_s2 + $0x20] sm:$0xff]   ;;  %v954_v31 = vld [vmem:[%s1165_s2 + $0x18] sm:$0xff]   ;;  %v956_v33 = vld [vmem:[%s1165_s2 + $0x50] sm:$0xff]  }
  0x12   : > { %873 = vmatpush3.bf16.msra.mxu1 %v945_v9  ;;  %v952_v29 = vld [vmem:[%s1165_s2 + $0xa0] sm:$0xff]   ;;  %v955_v32 = vld [vmem:[%s1165_s2 + $0x98] sm:$0xff]   ;;  %v957_v34 = vld [vmem:[%s1165_s2 + $0x10] sm:$0xff]  }
  0x13   : > { %v347_v14 = vor.u32 %v346_v10, %v335_v6  ;;  %v340_v15 = vor.u32 %v338_v7, %v337_v12  ;;  %874 = vmatprep.subr.bf16.mxu1 %v947_v13  ;;  %v958_v35 = vld [vmem:[%s1165_s2 + $0x90] sm:$0xff]   ;;  %v959_v36 = vld [vmem:[%s1165_s2 + $0x48] sm:$0xff]   ;;  %v962_v39 = vld [vmem:[%s1165_s2 + $0x40] sm:$0xff]  }
  0x14   : > { %v960_v37 = vld [vmem:[%s1165_s2 + $0x8] sm:$0xff]   ;;  %v963_v40 = vld [vmem:[%s1165_s2] sm:$0xff]  }
  0x15   : > { %v352_v17 = vsel %vm1056_vm4, %v347_v14, 0  ;;  %v345_v20 = vsel %vm1068_vm7, 0, %v340_v15  ;;  %v961_v38 = vld [vmem:[%s1165_s2 + $0x88] sm:$0xff]   ;;  %v964_v41 = vld [vmem:[%s1165_s2 + $0x80] sm:$0xff]  }
  0x16   : > { %356 = vrot.lane.b32.xlu0 %v352_v17, %s976_s26  ;;  %875 = vmatpush3.bf16.msra.mxu1 %v948_v16  ;;  %v835_v42 = vld [vmem:[%s1166_s3] ss:$0 sm:$0xff]  ;;  %v442_v18 = vld [vmem:[%s320_s12 + $0x8] sm:$0xff] }
  0x17   : > { %876 = vmatprep.subr.bf16.mxu1 %v950_v27  ;;  %v836_v45 = vld [vmem:[%s1168_s5] ss:$0 sm:$0xff] }
  0x18   : > { %v861_v4 = vld [vmem:[%s1167_s4] ss:$0 sm:$0xff] }
  0x19   : > { %v862_v8 = vld [vmem:[%s1169_s6] ss:$0 sm:$0xff] }
  0x1a   : > { %877 = vmatpush3.bf16.msra.mxu1 %v951_v28  ;;  %v441_v13 = vld [vmem:[%s320_s12] sm:$0xff] }
  0x1b   : > { %878 = vmatprep.subr.bf16.mxu1 %v953_v30 }
  0x1e   : > { %879 = vmatpush3.bf16.msra.mxu1 %v954_v31 }
  0x1f   : > { %880 = vmatprep.subr.bf16.mxu1 %v956_v33 }
  0x22   : > { %881 = vmatpush3.bf16.msra.mxu1 %v957_v34 }
  0x23   : > { %882 = vmatprep.subr.bf16.mxu1 %v959_v36 }
  0x26   : > { %883 = vmatpush3.bf16.msra.mxu1 %v960_v37 }
  0x27   : > { %884 = vmatprep.subr.bf16.mxu1 %v962_v39 }
  0x2a   : > { %885 = vmatpush3.bf16.msra.mxu1 %v963_v40 }
  0x81   : > { %v354_v19 = vpop.permute.xlu0 %353 }
  0x82   : > { %v361_v22 = vsel %vm358_vm8, %v345_v20, %v354_v19 }
  0x88   : > { %v357_v23 = vpop.permute.xlu0 %356 }
  0x89   : > { %v364_v24 = vsel %vm362_vm9, %v361_v22, %v357_v23 }
  0x8a   : > { %904 = vmatmul.mubr.msk.bf16.vlgmr.msra.gmra.mxu0 %vm372_vm10, %v364_v24 }
  0x8b   : > { %908 = vmatpush3.bf16.msra.mxu0 %v943_v21  ;;  %923 = vmatprep.mubr.msk.bf16.mxu0 %vm974_vm2, %v973_v0 }
  0x8c   : > { %909 = vmatprep.subr.bf16.mxu0 %v973_v0 }
  0x8f   : > { %910 = vmatpush3.bf16.msra.mxu0 %v946_v25 }
  0x90   : > { %911 = vmatprep.subr.bf16.mxu0 %v973_v0 }
  0x93   : > { %912 = vmatpush3.bf16.msra.mxu0 %v949_v26 }
  0x94   : > { %913 = vmatprep.subr.bf16.mxu0 %v973_v0 }
  0x97   : > { %914 = vmatpush3.bf16.msra.mxu0 %v952_v29 }
  0x98   : > { %915 = vmatprep.subr.bf16.mxu0 %v973_v0 }
  0x9b   : > { %916 = vmatpush3.bf16.msra.mxu0 %v955_v32 }
  0x9c   : > { %917 = vmatprep.subr.bf16.mxu0 %v973_v0 }
  0x9f   : > { %918 = vmatpush3.bf16.msra.mxu0 %v958_v35 }
  0xa0   : > { %919 = vmatprep.subr.bf16.mxu0 %v973_v0 }
  0xa3   : > { %920 = vmatpush3.bf16.msra.mxu0 %v961_v38 }
  0xa4   : > { %921 = vmatprep.subr.bf16.mxu0 %v973_v0 }
  0xa7   : > { %922 = vmatpush3.bf16.msra.mxu0 %v964_v41 }
 0x14a   : > { %v413_v43 = vpop.f32.mrf.mxu0 }
 0x14b   : > { %v427_v44 = vmul.f32 %v835_v42, %v413_v43 }
 0x14c   : > { %v905_v46 = vpop.f32.mrf.mxu0 }
 0x14d   : > { %v436_v48 = vadd.f32 %v836_v45, %v427_v44 }
 0x14e   : > { %v416_v47 = vpop.f32.mrf.mxu0 }
 0x14f   : > { %v428_v49 = vmul.f32 %v835_v42, %v416_v47  ;;  %v438_v52 = vmax.f32 %v436_v48, 0.0 }
 0x150   : > { %v906_v50 = vpop.f32.mrf.mxu0 }
 0x151   : > { %v437_v51 = vadd.f32 %v836_v45, %v428_v49 }
 0x153   : > { %v439_v53 = vmax.f32 %v437_v51, 0.0 }
 0x155   : > { %v440_v54 = vpack.c.bf16 %v439_v53, %v438_v52 }
 0x157   : > { %680 = vmatprep.mubr.bf16.mxu1 %v440_v54  ;;  %v444_v55 = vshrl.u32 %v440_v54, 16  ;;  %v447_v56 = vshll.u32 %v440_v54, 16 }
 0x159   : > { %v446_v57 = vrot.slane %v444_v55, 7  ;;  %v452_v58 = vrot.slane %v447_v56, 1 }
 0x15b   : > { %v449_v59 = vor.u32 %v447_v56, %v446_v57  ;;  %v453_v60 = vor.u32 %v452_v58, %v444_v55 }
 0x15d   : > { %v451_v61 = vsel %vm1068_vm7, 0, %v449_v59  ;;  %v455_v62 = vsel %vm1056_vm4, %v453_v60, 0 }
 0x15e   : > { %681 = vmatmul.mubr.bf16.vlgmr.msra.gmra.mxu1 %v451_v61  ;;  %924 = vmatmul.mubr.bf16.vlgmr.msra.gmra.mxu0 %v455_v62 }
 0x21e   : > { %v886_v63 = vpop.f32.mrf.mxu1  ;;  %v723_v0 = vpop.f32.mrf.mxu0 }
 0x220   : > { %v887_v1 = vpop.f32.mrf.mxu1  ;;  %v925_v2 = vpop.f32.mrf.mxu0 }
 0x221   : > { %v888_v3 = vadd.f32 %v887_v1, %v886_v63 }
 0x222   : > { %v889_v5 = vpop.f32.mrf.mxu1  ;;  %v726_v6 = vpop.f32.mrf.mxu0 }
 0x223   : > { %v724_v7 = vadd.f32 %v888_v3, %v723_v0 }
 0x224   : > { %v890_v9 = vpop.f32.mrf.mxu1  ;;  %v926_v10 = vpop.f32.mrf.mxu0 }
 0x225   : > { %v737_v11 = vmul.f32 %v861_v4, %v724_v7  ;;  %v891_v12 = vadd.f32 %v890_v9, %v889_v5 }
 0x227   : > { %v746_v14 = vadd.f32 %v862_v8, %v737_v11  ;;  %v727_v15 = vadd.f32 %v891_v12, %v726_v6 }
 0x229   : > { %v748_v16 = vadd.f32 %v746_v14, %v441_v13  ;;  %v738_v17 = vmul.f32 %v861_v4, %v727_v15 }
 0x22b   : > { %v750_v19 = vmax.f32 %v748_v16, 0.0  ;;  %v747_v20 = vadd.f32 %v862_v8, %v738_v17 }
 0x22d   : > { %752 = vst [vmem:[%s325_s16] sm:$0xff] %v750_v19  ;;  %v749_v21 = vadd.f32 %v747_v20, %v442_v18 }
 0x22f   : > { %v751_v22 = vmax.f32 %v749_v21, 0.0 }
 0x231   : > { %753 = vst [vmem:[%s325_s16 + $0x8] sm:$0xff] %v751_v22 }
 0x232 PF: > { %s18_s27 = sadd.s32 1, %s971_s27  }
 0x233   : > { %p15_p4 = scmp.ge.s32.totalorder %s18_s27, 4  }
 0x235   :  { %17 = sbr.rel (!%p15_p4) target bundleno = 1 (0x1), region = 85 }

</bundles_post_ra>
